<compile_context>
chip_gen: v7x
topology: tpu7x:2x2x1
jax: 0.10.0
libtpu: 0.0.40
codegen_flags: <defaults>
</compile_context>

<pallas_src>
import functools

import jax
import jax.numpy as jnp
import numpy as np
from jax.experimental import pallas as pl
from jax.experimental.pallas import tpu as pltpu


# ----------------------------- Pallas kernel ------------------------------- #

def fusion_kernel(loc_ref, glob_ref, o_ref, *, row_tile, resident_glob):
    # loc_ref : (row_tile, HW)  local features, rows = (n, c) pairs, lanes = spatial
    # glob_ref: (rows, 1) resident block  OR  (row_tile, 1) per-step block
    # o_ref   : (row_tile, HW)
    if resident_glob:
        start = pl.multiple_of(pl.program_id(0) * row_tile, row_tile)
        g = glob_ref[pl.ds(start, row_tile), :]          # slice of resident block
    else:
        g = glob_ref[...]
    # Keep the body to exactly one add + one max + one store (v5e vst-bound).
    o_ref[...] = jnp.maximum(loc_ref[...] + g, 0).astype(o_ref.dtype)


# ------------------------------- tiling helpers ----------------------------- #

def _sublane_pack(dtype):
    # Sub-32-bit dtypes pack along sublanes: f32 -> 8, bf16 -> 16, int8/fp8 -> 32.
    return {4: 8, 2: 16, 1: 32}.get(jnp.dtype(dtype).itemsize, 8)


def _pick_row_tile(rows, cols, itemsize, pack,
                   target_block_bytes=2 << 20, max_tile_rows=2048):
    """Largest divisor of `rows` that is a multiple of `pack`, caps the block at
    ~2 MiB, and is <= max_tile_rows.  Falls back to a single whole-array block
    (full-extent exemption from the (pack, 128) constraint)."""
    cap = min(max_tile_rows,
              max(pack, target_block_bytes // max(1, cols * itemsize)))
    cap = min(cap, rows)
    best = None
    t = pack
    while t <= cap:
        if rows % t == 0:
            best = t
        t += pack
    return best if best is not None else rows


# -------------------------------- wrapper ----------------------------------- #

def fusion(lr_local, lr_global):
    """lr_local: (N, C, H, W); lr_global: (N, C)
    -> ReLU(lr_local + lr_global[:, :, None, None])"""
    n, c, h, w = lr_local.shape
    assert lr_global.shape == (n, c), (lr_global.shape, (n, c))
    rows, cols = n * c, h * w
    dtype = lr_local.dtype
    itemsize = jnp.dtype(dtype).itemsize
    pack = _sublane_pack(dtype)

    # Lane-dense 2-D layout: rows = (n, c), lanes = flattened spatial (H*W).
    loc2d = lr_local.reshape(rows, cols)
    glob2d = lr_global.astype(dtype).reshape(rows, 1)

    row_tile = _pick_row_tile(rows, cols, itemsize, pack)
    grid = (rows // row_tile,)

    # Keep the (rows, 1) global vector VMEM-resident across steps unless its
    # lane-padded footprint (rows * 128 * itemsize) gets large.
    resident_glob = rows * 128 * itemsize <= (4 << 20)
    if resident_glob:
        glob_spec = pl.BlockSpec((rows, 1), lambda i: (0, 0))
    else:
        glob_spec = pl.BlockSpec((row_tile, 1), lambda i: (i, 0))

    kernel = functools.partial(fusion_kernel,
                               row_tile=row_tile,
                               resident_glob=resident_glob)

    # Advisory cost estimate so XLA can overlap this tiny call with neighbours.
    cost = pl.CostEstimate(
        flops=2 * rows * cols,
        bytes_accessed=(2 * rows * cols + rows) * itemsize,
        transcendentals=0,
    )

    # Only raise the scoped-VMEM limit when the footprint actually needs it.
    block_bytes = row_tile * cols * itemsize
    glob_bytes = (rows if resident_glob else 2 * row_tile) * 128 * itemsize
    vmem_needed = 2 * 2 * block_bytes + glob_bytes        # in+out, double-buffered
    compiler_kwargs = dict(dimension_semantics=("parallel",))
    if vmem_needed > (32 << 20):
        compiler_kwargs["vmem_limit_bytes"] = min(vmem_needed + (4 << 20), 64 << 20)

    out2d = pl.pallas_call(
        kernel,
        out_shape=jax.ShapeDtypeStruct((rows, cols), dtype),
        grid=grid,
        in_specs=[pl.BlockSpec((row_tile, cols), lambda i: (i, 0)),
                  glob_spec],
        out_specs=pl.BlockSpec((row_tile, cols), lambda i: (i, 0)),
        # Output reuses the local-features buffer (input 0 -> output 0).
        input_output_aliases={0: 0},
        cost_estimate=cost,
        compiler_params=pltpu.CompilerParams(**compiler_kwargs),
    )(loc2d, glob2d)
    return out2d.reshape(n, c, h, w)


# ------------------------------- reference ---------------------------------- #

def reference(lr_local, lr_global):
    return jax.nn.relu(lr_local + lr_global[:, :, None, None])


if __name__ == "__main__":
    # Shapes consistent with DBLLNet's Fusion call site:
    # LrLocalFeatures (N, C, H, W), LrGlobalFeatures (N, C) viewed as (N, C, 1, 1).
    N, C, H, W = 2, 16, 16, 16

    key = jax.random.PRNGKey(0)
    k_loc, k_glob = jax.random.split(key)
    lr_local = jax.random.normal(k_loc, (N, C, H, W), jnp.float32)
    lr_global = jax.random.normal(k_glob, (N, C), jnp.float32)

    ref = reference(lr_local, lr_global)           # before the (aliasing) kernel
    out = jax.block_until_ready(fusion(lr_local, lr_global))

    assert out.shape == (N, C, H, W), out.shape
    np.testing.assert_allclose(np.asarray(out), np.asarray(ref), rtol=1e-6, atol=1e-6)
    print("KERNEL_OK")
</pallas_src>

<mosaic_0001>
module attributes {stable_mosaic.version = 11 : i64} {
  func.func @fusion_kernel(%arg0: i32, %arg1: memref<32x256xf32, #tpu.memory_space<vmem>>, %arg2: memref<32x1xf32, #tpu.memory_space<vmem>>, %arg3: memref<32x256xf32, #tpu.memory_space<vmem>>) attributes {dimension_semantics = [#tpu.dimension_semantics<parallel>], iteration_bounds = array<i64: 1>, scalar_prefetch = 0 : i64, scratch_operands = 0 : i64, tpu.core_type = #tpu.core_type<tc>, window_params = [{transform_indices = @transform_0, window_bounds = array<i64: 32, 256>}, {pipeline_mode = #tpu.pipeline_mode<synchronous>, transform_indices = @transform_1, window_bounds = array<i64: 32, 1>}, {transform_indices = @transform_2, window_bounds = array<i64: 32, 256>}]} {
    %c32_i32 = arith.constant 32 : i32
    %0 = arith.muli %arg0, %c32_i32 : i32
    %1 = tpu.assume_multiple %0, 32 : i32
    %2 = arith.index_cast %1 : i32 to index
    %c0 = arith.constant 0 : index
    %3 = vector.load %arg2[%2, %c0] : memref<32x1xf32, #tpu.memory_space<vmem>>, vector<32x1xf32>
    %c0_0 = arith.constant 0 : index
    %c0_1 = arith.constant 0 : index
    %4 = vector.load %arg1[%c0_0, %c0_1] : memref<32x256xf32, #tpu.memory_space<vmem>>, vector<32x256xf32>
    %5 = vector.broadcast %3 : vector<32x1xf32> to vector<32x256xf32>
    %6 = arith.addf %4, %5 : vector<32x256xf32>
    %cst = arith.constant 0.000000e+00 : f32
    %7 = vector.broadcast %cst : f32 to vector<32x256xf32>
    %8 = arith.maximumf %6, %7 : vector<32x256xf32>
    %c0_2 = arith.constant 0 : index
    %c0_3 = arith.constant 0 : index
    %9 = vector.load %arg3[%c0_2, %c0_3] : memref<32x256xf32, #tpu.memory_space<vmem>>, vector<32x256xf32>
    tpu.vector_store %arg3[%c0_2, %c0_3], %8 {strides = array<i32>} : memref<32x256xf32, #tpu.memory_space<vmem>>, vector<32x256xf32>,
    return
  }
  func.func @transform_0(%arg0: i32) -> (i32, i32) {
    %c0_i32 = arith.constant 0 : i32
    %c0_i32_0 = arith.constant 0 : i32
    return %arg0, %c0_i32 : i32, i32
  }
  func.func @transform_1(%arg0: i32) -> (i32, i32) {
    %c0_i32 = arith.constant 0 : i32
    %c0_i32_0 = arith.constant 0 : i32
    %c0_i32_1 = arith.constant 0 : i32
    return %c0_i32, %c0_i32_0 : i32, i32
  }
  func.func @transform_2(%arg0: i32) -> (i32, i32) {
    %c0_i32 = arith.constant 0 : i32
    %c0_i32_0 = arith.constant 0 : i32
    return %arg0, %c0_i32 : i32, i32
  }
}

</mosaic_0001>

<bundles_post_ra>
// kernel: tpu_custom_call.1
= control target key start
LH: loop header
LB: loop body
LE: loop exit
PB: predicated region body
PF: predicated region fallthrough
CT: control target
= control target key end

     0   :  { %7 = vsyncpa [#allocation3], 0  ;;  %s218_s0 = inlined_call_operand.hbm [shape: f32[32,256], index: 0, kind: input, shape index: {}, may-alias: {0,2}]   ;;  %s219_s1 = inlined_call_operand.vmem [shape: f32[32,1], index: 1, kind: input, shape index: {}]   ;;  %s220_s2 = inlined_call_operand.hbm [shape: f32[32,256], index: 2, kind: output, shape index: {}, may-alias: {0,2}]  }
   0x1   :  { %8 = vsyncpa [#allocation4], 0  ;;  %s156_s9 = smov [#allocation2]   ;;  %s108_s13 = scalar_lea.hbm %s218_s0, 1024 }
   0x2   :  { %s14_s10 = sshll.u32 %s156_s9, 4  ;;  %p109_p0 = scmp.ne.s32.totalorder %s218_s0, %s108_s13  ;;  %s15_s10 = int_to_ptr.vmem [resolvable:$true] %s14_s10 }
   0x3   :  { %p112_p1 = scmp.lt.u32.totalorder %s108_s13, %s218_s0 }
   0x5   :  { %p114_p2 = pnand %p112_p1, %p109_p0 }
   0x7   :  { %117 = shalt.err (!%p114_p2)
}
   0x8   :  { %s118_s18 = scalar_lea.vmem %s15_s10, 1024  ;;  %p123_p4 = scmp.lt.s32.totalorder %s15_s10, %s15_s10 }
   0x9   :  { %p119_p3 = scmp.ne.s32.totalorder %s15_s10, %s118_s18  ;;  %p124_p5 = scmp.lt.s32.totalorder %s118_s18, %s118_s18 }
   0xb   :  { %p125_p6 = por %p124_p5, %p123_p4 }
   0xd   :  { %p126_p7 = pnand %p125_p6, %p119_p3 }
   0xf   :  { %129 = shalt.err (!%p126_p7)
}
  0x10   :  { %s157_s19 = smov 256   ;;  %s158_s20 = smov 16  }
  0x11   :  { %20 = dma.hbm_to_vmem [thread:$0]  %s218_s0, 1024, %s15_s10, [#allocation3], %s157_s19, %s157_s19, %s158_s20  }
  0x12   :  { %152 = dma.done.wait [#allocation3], 1024  }
  0x13   :  { %153 = vsyncadd [#allocation3], 4294966272  ;;  %v159_v0 = vmov 0   ;;  %v30_v1 = vld [vmem:[%s219_s1 + $0x10] sm:$0xff]  ;;  %v28_v2 = vld [vmem:[%s219_s1] sm:$0xff] }
  0x14   :  { %107 = vset.pattern.permute.xlu1 %v159_v0  ;;  %106 = vset.pattern.permute.xlu0 %v159_v0  ;;  %v31_v3 = vld [vmem:[%s219_s1 + $0x18] sm:$0xff]  ;;  %v29_v4 = vld [vmem:[%s219_s1 + $0x8] sm:$0xff]  ;;  %v36_v5 = vld [vmem:[#allocation2 + $0x20] sm:$0xff]  ;;  %s160_s1 = smov [#allocation5]  }
  0x15   :  { %52 = vperm.xlu1 %107, %v30_v1   ;;  %42 = vperm.xlu0 %106, %v28_v2   ;;  %v37_v6 = vld [vmem:[#allocation2 + $0x28] sm:$0xff]  ;;  %v32_v7 = vld [vmem:[#allocation2] sm:$0xff]  ;;  %v38_v15 = vld [vmem:[#allocation2 + $0x30] sm:$0xff]  ;;  %s89_s30 = sshll.u32 %s160_s1, 4  ;;  %s90_s30 = int_to_ptr.vmem [resolvable:$true] %s89_s30 }
  0x16   :  { %v33_v8 = vld [vmem:[#allocation2 + $0x8] sm:$0xff]  ;;  %v39_v16 = vld [vmem:[#allocation2 + $0x38] sm:$0xff]  ;;  %v34_v17 = vld [vmem:[#allocation2 + $0x10] sm:$0xff]  ;;  %s130_s3 = scalar_lea.vmem %s90_s30, 1024  ;;  %p135_p9 = scmp.lt.s32.totalorder %s90_s30, %s90_s30 }
  0x17   :  { %v35_v18 = vld [vmem:[#allocation2 + $0x18] sm:$0xff]  ;;  %p131_p8 = scmp.ne.s32.totalorder %s90_s30, %s130_s3  ;;  %p136_p10 = scmp.lt.s32.totalorder %s130_s3, %s130_s3 }
  0x19   :  { %57 = vperm.xlu1 %107, %v31_v3   ;;  %47 = vperm.xlu0 %106, %v29_v4   ;;  %p137_p11 = por %p136_p10, %p135_p9 }
  0x1b   :  { %p138_p12 = pnand %p137_p11, %p131_p8 }
  0x94   :  { %v53_v9 = vpop.permute.xlu1 %52  ;;  %v43_v10 = vpop.permute.xlu0 %42 }
  0x95   :  { %v64_v11 = vadd.f32 %v53_v9, %v36_v5  ;;  %v65_v12 = vadd.f32 %v53_v9, %v37_v6  ;;  %v60_v13 = vadd.f32 %v43_v10, %v32_v7  ;;  %v61_v14 = vadd.f32 %v43_v10, %v33_v8 }
  0x97   :  { %v72_v19 = vmax.f32 %v64_v11, 0.0  ;;  %v73_v20 = vmax.f32 %v65_v12, 0.0  ;;  %v68_v21 = vmax.f32 %v60_v13, 0.0  ;;  %v69_v22 = vmax.f32 %v61_v14, 0.0 }
  0x98   :  { %v58_v23 = vpop.permute.xlu1 %57  ;;  %v48_v24 = vpop.permute.xlu0 %47 }
  0x99   :  { %80 = vst [vmem:[#allocation5 + $0x20] sm:$0xff] %v72_v19  ;;  %81 = vst [vmem:[#allocation5 + $0x28] sm:$0xff] %v73_v20  ;;  %v66_v25 = vadd.f32 %v58_v23, %v38_v15  ;;  %v67_v26 = vadd.f32 %v58_v23, %v39_v16  ;;  %v62_v27 = vadd.f32 %v48_v24, %v34_v17 }
  0x9a   :  { %76 = vst [vmem:[#allocation5] sm:$0xff] %v68_v21  ;;  %77 = vst [vmem:[#allocation5 + $0x8] sm:$0xff] %v69_v22  ;;  %v63_v28 = vadd.f32 %v48_v24, %v35_v18 }
  0x9b   :  { %v74_v29 = vmax.f32 %v66_v25, 0.0  ;;  %v75_v30 = vmax.f32 %v67_v26, 0.0  ;;  %v70_v31 = vmax.f32 %v62_v27, 0.0 }
  0x9c   :  { %v71_v32 = vmax.f32 %v63_v28, 0.0 }
  0x9d   :  { %82 = vst [vmem:[#allocation5 + $0x30] sm:$0xff] %v74_v29  ;;  %83 = vst [vmem:[#allocation5 + $0x38] sm:$0xff] %v75_v30 }
  0x9e   :  { %78 = vst [vmem:[#allocation5 + $0x10] sm:$0xff] %v70_v31  ;;  %79 = vst [vmem:[#allocation5 + $0x18] sm:$0xff] %v71_v32 }
  0x9f   :  { %141 = shalt.err (!%p138_p12)
}
  0xa0   :  { %s142_s6 = scalar_lea.hbm %s220_s2, 1024 }
  0xa1   :  { %p143_p13 = scmp.ne.s32.totalorder %s220_s2, %s142_s6  ;;  %p146_p0 = scmp.lt.u32.totalorder %s142_s6, %s220_s2 }
  0xa3   :  { %p148_p1 = pnand %p146_p0, %p143_p13 }
  0xa5   :  { %151 = shalt.err (!%p148_p1)
}
  0xa6   :  { %95 = dma.vmem_to_hbm [thread:$0]  %s90_s30, 1024, %s220_s2, [#allocation4], %s157_s19, %s157_s19, %s158_s20  }
  0xa7   :  { %154 = dma.done.wait [#allocation4], 1024  }
  0xa8   :  { %155 = vsyncadd [#allocation4], 4294966272 }
  0xa9   :  { %99 = vsyncpa [#allocation3], 1 }
  0xaa   :  { %100 = vsyncpa [#allocation4], 1 }

</bundles_post_ra>
